<compile_context>
chip_gen: v5e
topology: v5e:2x2
jax: 0.10.0
libtpu: 0.0.40
codegen_flags: <defaults>
</compile_context>

<pallas_src>
import functools

import jax
import jax.numpy as jnp
from jax.experimental import pallas as pl
from jax.experimental.pallas import tpu as pltpu


def _round_up(a, b):
    return (a + b - 1) // b * b


def _build_weff_kernel(*refs, has_scaling, has_rank):
    """Builds one (tn, in_f) tile of the effective weight (runs once per tile)."""
    it = iter(refs)
    w = next(it)[...].astype(jnp.float32)                      # (tn, in_f)
    if has_scaling:
        mlb = next(it)[...].astype(jnp.float32)                # (tn, sr), pre /scaling_rank
        mla = next(it)[...].astype(jnp.float32)                # (sr, in_f)
        scale = jax.lax.dot_general(
            mlb, mla, dimension_numbers=(((1,), (0,)), ((), ())),
            preferred_element_type=jnp.float32)
        w = w * scale
    if has_rank:
        lb = next(it)[...].astype(jnp.float32)                 # (tn, r), pre /rank
        la = next(it)[...].astype(jnp.float32)                 # (r, in_f)
        delta = jax.lax.dot_general(
            lb, la, dimension_numbers=(((1,), (0,)), ((), ())),
            preferred_element_type=jnp.float32)
        w = w + delta
    o_ref = next(it)
    o_ref[...] = w.astype(o_ref.dtype)


def _matmul_bias_kernel(x_ref, w_ref, b_ref, o_ref):
    # (tm, in_f) x (tn, in_f) contracted on in_f of BOTH operands -> (tm, tn).
    # No transpose of the (out, in) weight is materialized; MXU gets native layout.
    acc = jax.lax.dot_general(
        x_ref[...], w_ref[...],
        dimension_numbers=(((1,), (1,)), ((), ())),
        preferred_element_type=jnp.float32)
    o_ref[...] = (acc + b_ref[...].astype(jnp.float32)).astype(o_ref.dtype)


def lora_linear(x, weight, bias, lora_a, lora_b, multi_lora_a, multi_lora_b,
                *, rank, scaling_rank, compute_dtype=jnp.bfloat16,
                tm_max=256, tn_max=256):
    """x: (B, S, in_features) -> (B, S, out_features)."""
    # TODO(synk): the torch fast path for (scaling_rank == 1 and rank == 0)
    # depends on .requires_grad flags (training-time concept); only the general
    # branch is implemented here.
    # TODO(synk): in_features is kept whole per block; very large in_features
    # would need a K grid axis ("arbitrary", last) with an f32 VMEM accumulator.
    B, S, in_f = x.shape
    out_f = weight.shape[0]
    out_dtype = x.dtype
    M = B * S

    # ---- tile sizes / padding (cdiv-style, no dropped rows) ------------------
    tm = min(tm_max, _round_up(M, 8))
    m_pad = _round_up(M, tm)
    tn = min(out_f, tn_max)
    out_pad = _round_up(out_f, tn)
    pad_o = out_pad - out_f

    x2d = jnp.pad(x.reshape(M, in_f).astype(compute_dtype),
                  ((0, m_pad - M), (0, 0)))
    w_f32 = jnp.pad(weight.astype(jnp.float32), ((0, pad_o), (0, 0)))
    if bias is None:
        bias = jnp.zeros((out_f,), jnp.float32)
    b2d = jnp.pad(bias.astype(jnp.float32), (0, pad_o)).reshape(1, out_pad)

    has_scaling = bool(scaling_rank)
    has_rank = bool(rank)

    # ---- prologue: build effective weight ONCE (hoisted out of hot loop) -----
    build_args = [w_f32]
    build_specs = [pl.BlockSpec((tn, in_f), lambda j: (j, 0))]
    if has_scaling:
        mlb = jnp.pad((multi_lora_b / scaling_rank).astype(jnp.float32),
                      ((0, pad_o), (0, 0)))
        mla = multi_lora_a.astype(jnp.float32)
        build_args += [mlb, mla]
        build_specs += [pl.BlockSpec((tn, scaling_rank), lambda j: (j, 0)),
                        pl.BlockSpec((scaling_rank, in_f), lambda j: (0, 0))]
    if has_rank:
        lb = jnp.pad((lora_b / rank).astype(jnp.float32), ((0, pad_o), (0, 0)))
        la = lora_a.astype(jnp.float32)
        build_args += [lb, la]
        build_specs += [pl.BlockSpec((tn, rank), lambda j: (j, 0)),
                        pl.BlockSpec((rank, in_f), lambda j: (0, 0))]

    w_eff = pl.pallas_call(
        functools.partial(_build_weff_kernel,
                          has_scaling=has_scaling, has_rank=has_rank),
        out_shape=jax.ShapeDtypeStruct((out_pad, in_f), compute_dtype),
        grid=(out_pad // tn,),
        in_specs=build_specs,
        out_specs=pl.BlockSpec((tn, in_f), lambda j: (j, 0)),
        compiler_params=pltpu.CompilerParams(
            dimension_semantics=("parallel",)),
    )(*build_args)

    # ---- main matmul: MXU-bound tiled GEMM + bias -----------------------------
    itemsize = jnp.dtype(compute_dtype).itemsize
    step_bytes = 2 * (tm * in_f * itemsize            # x tile (double buffered)
                      + tn * in_f * itemsize          # weight tile
                      + tn * 4                        # bias tile
                      + tm * tn * jnp.dtype(out_dtype).itemsize)  # out tile
    vmem_limit = int(min(max(4 * step_bytes, 32 * 1024 * 1024),
                         60 * 1024 * 1024))           # stay under v7x's 64 MiB

    out2d = pl.pallas_call(
        _matmul_bias_kernel,
        out_shape=jax.ShapeDtypeStruct((m_pad, out_pad), out_dtype),
        # M innermost so the weight tile stays resident across M steps.
        grid=(out_pad // tn, m_pad // tm),
        in_specs=[
            pl.BlockSpec((tm, in_f), lambda j, i: (i, 0)),    # x
            pl.BlockSpec((tn, in_f), lambda j, i: (j, 0)),    # w_eff (out, in)
            pl.BlockSpec((1, tn), lambda j, i: (0, j)),       # bias
        ],
        out_specs=pl.BlockSpec((tm, tn), lambda j, i: (i, j)),
        compiler_params=pltpu.CompilerParams(
            dimension_semantics=("parallel", "parallel"),
            vmem_limit_bytes=vmem_limit),
    )(x2d, w_eff, b2d)

    return out2d[:M, :out_f].reshape(B, S, out_f)


def lora_linear_ref(x, weight, bias, lora_a, lora_b, multi_lora_a,
                    multi_lora_b, *, rank, scaling_rank):
    w = weight
    if scaling_rank:
        w = w * (multi_lora_b @ multi_lora_a) / scaling_rank
    if rank:
        w = w + (lora_b @ lora_a) / rank
    return jnp.einsum("bsi,oi->bso", x, w) + bias


if __name__ == "__main__":
    # Module hyperparameters (synthetic, deterministic init).
    B, S = 2, 8
    in_features, out_features = 32, 48
    rank, scaling_rank = 4, 2
    init_scale = -0.05  # negative -> lora_b and multi_lora_b are random

    key = jax.random.PRNGKey(0)
    k = jax.random.split(key, 8)

    x = jax.random.normal(k[0], (B, S, in_features), jnp.float32)

    # Base linear layer parameters.
    weight = jax.random.normal(k[1], (out_features, in_features),
                               jnp.float32) * 0.1
    bias = jax.random.normal(k[2], (out_features,), jnp.float32) * 0.1

    # LoRA parameters (matching torch init shapes / rules).
    lora_a = jax.random.normal(k[3], (rank, in_features),
                               jnp.float32) * init_scale
    lora_b = jax.random.normal(k[4], (out_features, rank),
                               jnp.float32) * init_scale  # init_scale < 0
    multi_lora_a = 1.0 + jax.random.normal(
        k[5], (scaling_rank, in_features), jnp.float32) * init_scale
    multi_lora_b = 1.0 + jax.random.normal(
        k[6], (out_features, scaling_rank), jnp.float32) * init_scale

    ref = lora_linear_ref(x, weight, bias, lora_a, lora_b, multi_lora_a,
                          multi_lora_b, rank=rank, scaling_rank=scaling_rank)

    # f32 compute path (tight check of semantics).
    out_f32 = lora_linear(x, weight, bias, lora_a, lora_b, multi_lora_a,
                          multi_lora_b, rank=rank, scaling_rank=scaling_rank,
                          compute_dtype=jnp.float32)
    out_f32 = jax.block_until_ready(out_f32)
    assert out_f32.shape == (B, S, out_features)
    assert jnp.allclose(out_f32, ref, atol=1e-4, rtol=1e-4)

    # bf16 compute path (default; MXU-friendly) — looser tolerance.
    out_bf16 = lora_linear(x, weight, bias, lora_a, lora_b, multi_lora_a,
                           multi_lora_b, rank=rank, scaling_rank=scaling_rank,
                           compute_dtype=jnp.bfloat16)
    out_bf16 = jax.block_until_ready(out_bf16)
    assert out_bf16.shape == (B, S, out_features)
    assert jnp.allclose(out_bf16, ref, atol=3e-2, rtol=3e-2)

    print("KERNEL_OK")
</pallas_src>

<mosaic_0001>
module attributes {stable_mosaic.version = 11 : i64} {
  func.func @_build_weff_kernel(%arg0: i32, %arg1: memref<48x32xf32, #tpu.memory_space<vmem>>, %arg2: memref<48x2xf32, #tpu.memory_space<vmem>>, %arg3: memref<2x32xf32, #tpu.memory_space<vmem>>, %arg4: memref<48x4xf32, #tpu.memory_space<vmem>>, %arg5: memref<4x32xf32, #tpu.memory_space<vmem>>, %arg6: memref<48x32xf32, #tpu.memory_space<vmem>>) attributes {dimension_semantics = [#tpu.dimension_semantics<parallel>], iteration_bounds = array<i64: 1>, scalar_prefetch = 0 : i64, scratch_operands = 0 : i64, tpu.core_type = #tpu.core_type<tc>, window_params = [{transform_indices = @transform_0, window_bounds = array<i64: 48, 32>}, {transform_indices = @transform_1, window_bounds = array<i64: 48, 2>}, {pipeline_mode = #tpu.pipeline_mode<synchronous>, transform_indices = @transform_2, window_bounds = array<i64: 2, 32>}, {transform_indices = @transform_3, window_bounds = array<i64: 48, 4>}, {pipeline_mode = #tpu.pipeline_mode<synchronous>, transform_indices = @transform_4, window_bounds = array<i64: 4, 32>}, {transform_indices = @transform_5, window_bounds = array<i64: 48, 32>}]} {
    %c0 = arith.constant 0 : index
    %c0_0 = arith.constant 0 : index
    %0 = vector.load %arg1[%c0, %c0_0] : memref<48x32xf32, #tpu.memory_space<vmem>>, vector<48x32xf32>
    %c0_1 = arith.constant 0 : index
    %c0_2 = arith.constant 0 : index
    %1 = vector.load %arg2[%c0_1, %c0_2] : memref<48x2xf32, #tpu.memory_space<vmem>>, vector<48x2xf32>
    %c0_3 = arith.constant 0 : index
    %c0_4 = arith.constant 0 : index
    %2 = vector.load %arg3[%c0_3, %c0_4] : memref<2x32xf32, #tpu.memory_space<vmem>>, vector<2x32xf32>
    %cst = arith.constant dense<0.000000e+00> : vector<48x32xf32>
    %3 = tpu.matmul %1, %2, %cst {dimension_numbers = #tpu.dot_dimension_numbers<[1], [0], [0], [1], [0, 0, 1, 1], [], []>} : vector<48x2xf32>, vector<2x32xf32>, vector<48x32xf32> -> vector<48x32xf32>
    %4 = arith.mulf %0, %3 : vector<48x32xf32>
    %c0_5 = arith.constant 0 : index
    %c0_6 = arith.constant 0 : index
    %5 = vector.load %arg4[%c0_5, %c0_6] : memref<48x4xf32, #tpu.memory_space<vmem>>, vector<48x4xf32>
    %c0_7 = arith.constant 0 : index
    %c0_8 = arith.constant 0 : index
    %6 = vector.load %arg5[%c0_7, %c0_8] : memref<4x32xf32, #tpu.memory_space<vmem>>, vector<4x32xf32>
    %cst_9 = arith.constant dense<0.000000e+00> : vector<48x32xf32>
    %7 = tpu.matmul %5, %6, %cst_9 {dimension_numbers = #tpu.dot_dimension_numbers<[1], [0], [0], [1], [0, 0, 1, 1], [], []>} : vector<48x4xf32>, vector<4x32xf32>, vector<48x32xf32> -> vector<48x32xf32>
    %8 = arith.addf %4, %7 : vector<48x32xf32>
    %c0_10 = arith.constant 0 : index
    %c0_11 = arith.constant 0 : index
    %9 = vector.load %arg6[%c0_10, %c0_11] : memref<48x32xf32, #tpu.memory_space<vmem>>, vector<48x32xf32>
    tpu.vector_store %arg6[%c0_10, %c0_11], %8 {strides = array<i32>} : memref<48x32xf32, #tpu.memory_space<vmem>>, vector<48x32xf32>,
    return
  }
  func.func @transform_0(%arg0: i32) -> (i32, i32) {
    %c0_i32 = arith.constant 0 : i32
    %c0_i32_0 = arith.constant 0 : i32
    return %arg0, %c0_i32 : i32, i32
  }
  func.func @transform_1(%arg0: i32) -> (i32, i32) {
    %c0_i32 = arith.constant 0 : i32
    %c0_i32_0 = arith.constant 0 : i32
    return %arg0, %c0_i32 : i32, i32
  }
  func.func @transform_2(%arg0: i32) -> (i32, i32) {
    %c0_i32 = arith.constant 0 : i32
    %c0_i32_0 = arith.constant 0 : i32
    %c0_i32_1 = arith.constant 0 : i32
    return %c0_i32, %c0_i32_0 : i32, i32
  }
  func.func @transform_3(%arg0: i32) -> (i32, i32) {
    %c0_i32 = arith.constant 0 : i32
    %c0_i32_0 = arith.constant 0 : i32
    return %arg0, %c0_i32 : i32, i32
  }
  func.func @transform_4(%arg0: i32) -> (i32, i32) {
    %c0_i32 = arith.constant 0 : i32
    %c0_i32_0 = arith.constant 0 : i32
    %c0_i32_1 = arith.constant 0 : i32
    return %c0_i32, %c0_i32_0 : i32, i32
  }
  func.func @transform_5(%arg0: i32) -> (i32, i32) {
    %c0_i32 = arith.constant 0 : i32
    %c0_i32_0 = arith.constant 0 : i32
    return %arg0, %c0_i32 : i32, i32
  }
}

</mosaic_0001>

<bundles_post_ra>
// kernel: tpu_custom_call.1
= control target key start
LH: loop header
LB: loop body
LE: loop exit
PB: predicated region body
PF: predicated region fallthrough
CT: control target
= control target key end

     0   :  { %vm52_vm0 = vcmask 1041408   ;;  %vm33_vm1 = vcmask 15360   ;;  %vm123_vm2 = vcmask 1043456   ;;  %vm104_vm3 = vcmask 31744   ;;  %s323_s2 = inlined_call_operand.vmem [shape: f32[2,32], index: 2, kind: input, shape index: {}]   ;;  %s324_s1 = inlined_call_operand.vmem [shape: f32[48,2], index: 1, kind: input, shape index: {}]   ;;  %s325_s4 = inlined_call_operand.vmem [shape: f32[4,32], index: 4, kind: input, shape index: {}]   ;;  %s326_s3 = inlined_call_operand.vmem [shape: f32[48,4], index: 3, kind: input, shape index: {}]   ;;  %s327_s0 = inlined_call_operand.vmem [shape: f32[48,32], index: 0, kind: input, shape index: {}]   ;;  %s328_s5 = inlined_call_operand.vmem [shape: f32[48,32], index: 5, kind: output, shape index: {}]  }
   0x1   :  { %v32_v0 = vld [vmem:[%s323_s2] sm:$0x3]  ;;  %v29_v1 = vld [vmem:[%s324_s1 + $0x18] sm:$0xff]  ;;  %v27_v8 = vld [vmem:[%s324_s1 + $0x8] sm:$0xff]  ;;  %vm168_vm4 = vcmask 261120  }
   0x2   :  { %v103_v2 = vld [vmem:[%s325_s4] sm:$0xf]  ;;  %193 = vmatpush.msk.msra.mxu2 %vm52_vm0, %v32_v0  ;;  %v100_v3 = vld [vmem:[%s326_s3 + $0x18] sm:$0xff]  ;;  %179 = vmatpush.msk.msra.mxu0 %vm52_vm0, %v32_v0  ;;  %v98_v9 = vld [vmem:[%s326_s3 + $0x8] sm:$0xff] }
   0x3   :  { %194 = vmatpush.msk.msra.mxu3 %vm123_vm2, %v103_v2  ;;  %v26_v4 = vld [vmem:[%s324_s1] sm:$0xff]  ;;  %183 = vmatmul.msk.f32.vlgmr.msra.gmra.mxu2 %vm33_vm1, %v29_v1  ;;  %v31_v10 = vld [vmem:[%s324_s1 + $0x28] sm:$0xff]  ;;  %v28_v12 = vld [vmem:[%s324_s1 + $0x10] sm:$0xff] }
   0x4   :  { %190 = vmatmul.msk.f32.vlgmr.msra.gmra.mxu3 %vm104_vm3, %v100_v3  ;;  %v97_v5 = vld [vmem:[%s326_s3] sm:$0xff]  ;;  %186 = vmatpush.msk.msra.mxu1 %vm123_vm2, %v103_v2  ;;  %v102_v11 = vld [vmem:[%s326_s3 + $0x28] sm:$0xff]  ;;  %v99_v13 = vld [vmem:[%s326_s3 + $0x10] sm:$0xff] }
   0x5   :  { %180 = vmatmul.msk.f32.vlgmr.msra.gmra.mxu0 %vm33_vm1, %v26_v4  ;;  %187 = vmatmul.msk.f32.vlgmr.msra.gmra.mxu1 %vm104_vm3, %v97_v5  ;;  %v30_v6 = vld [vmem:[%s324_s1 + $0x20] sm:$0xff]  ;;  %v23_v18 = vld [vmem:[%s327_s0 + $0x18] sm:$0xff]  ;;  %v21_v23 = vld [vmem:[%s327_s0 + $0x8] sm:$0xff] }
   0x6   :  { %v101_v7 = vld [vmem:[%s326_s3 + $0x20] sm:$0xff]  ;;  %v22_v33 = vld [vmem:[%s327_s0 + $0x10] sm:$0xff]  ;;  %v25_v38 = vld [vmem:[%s327_s0 + $0x28] sm:$0xff] }
   0x7   :  { %v20_v14 = vld [vmem:[%s327_s0] sm:$0xff] }
   0x8   :  { %v24_v28 = vld [vmem:[%s327_s0 + $0x20] sm:$0xff] }
   0xb   :  { %184 = vmatmul.msk.f32.gmra.mxu2 %vm33_vm1, %v30_v6 }
   0xc   :  { %191 = vmatmul.msk.f32.gmra.mxu3 %vm104_vm3, %v101_v7 }
   0xd   :  { %181 = vmatmul.msk.f32.gmra.mxu0 %vm33_vm1, %v27_v8  ;;  %188 = vmatmul.msk.f32.gmra.mxu1 %vm104_vm3, %v98_v9 }
  0x13   :  { %185 = vmatmul.msk.f32.gmra.mxu2 %vm33_vm1, %v31_v10 }
  0x14   :  { %192 = vmatmul.msk.f32.gmra.mxu3 %vm104_vm3, %v102_v11 }
  0x15   :  { %182 = vmatmul.msk.f32.gmra.mxu0 %vm33_vm1, %v28_v12  ;;  %189 = vmatmul.msk.f32.gmra.mxu1 %vm104_vm3, %v99_v13 }
  0x82   :  { %v73_v15 = vpop.f32.mrf.mxu0  ;;  %v144_v16 = vpop.f32.mrf.mxu1 }
  0x83   :  { %v91_v17 = vmul.f32 %v73_v15, %v20_v14 }
  0x85   :  { %v162_v19 = vadd.f32 %v144_v16, %v91_v17 }
  0x86   :  { %v82_v20 = vpop.f32.mrf.mxu2 }
  0x87   :  { %v153_v21 = vpop.f32.mrf.mxu3  ;;  %v94_v22 = vmul.f32 %v82_v20, %v23_v18  ;;  %169 = vst.msk [vmem:[%s328_s5] sm:$0xff] %vm168_vm4, %v162_v19 }
  0x89   :  { %v165_v24 = vadd.f32 %v153_v21, %v94_v22 }
  0x8a   :  { %v76_v25 = vpop.f32.mrf.mxu0  ;;  %v147_v26 = vpop.f32.mrf.mxu1 }
  0x8b   :  { %172 = vst.msk [vmem:[%s328_s5 + $0x18] sm:$0xff] %vm168_vm4, %v165_v24  ;;  %v92_v27 = vmul.f32 %v76_v25, %v21_v23 }
  0x8d   :  { %v163_v29 = vadd.f32 %v147_v26, %v92_v27 }
  0x8e   :  { %v85_v30 = vpop.f32.mrf.mxu2 }
  0x8f   :  { %v156_v31 = vpop.f32.mrf.mxu3  ;;  %v95_v32 = vmul.f32 %v85_v30, %v24_v28  ;;  %170 = vst.msk [vmem:[%s328_s5 + $0x8] sm:$0xff] %vm168_vm4, %v163_v29 }
  0x91   :  { %v166_v34 = vadd.f32 %v156_v31, %v95_v32 }
  0x92   :  { %v79_v35 = vpop.f32.mrf.mxu0  ;;  %v150_v36 = vpop.f32.mrf.mxu1 }
  0x93   :  { %173 = vst.msk [vmem:[%s328_s5 + $0x20] sm:$0xff] %vm168_vm4, %v166_v34  ;;  %v93_v37 = vmul.f32 %v79_v35, %v22_v33 }
  0x95   :  { %v164_v39 = vadd.f32 %v150_v36, %v93_v37 }
  0x96   :  { %v88_v40 = vpop.f32.mrf.mxu2 }
  0x97   :  { %v159_v41 = vpop.f32.mrf.mxu3  ;;  %v96_v42 = vmul.f32 %v88_v40, %v25_v38  ;;  %171 = vst.msk [vmem:[%s328_s5 + $0x10] sm:$0xff] %vm168_vm4, %v164_v39 }
  0x99   :  { %v167_v43 = vadd.f32 %v159_v41, %v96_v42 }
  0x9b   :  { %174 = vst.msk [vmem:[%s328_s5 + $0x28] sm:$0xff] %vm168_vm4, %v167_v43 }

</bundles_post_ra>
